<compile_context>
chip_gen: v6e
topology: v6e:2x2x1
jax: 0.10.0
libtpu: 0.0.40
codegen_flags: <defaults>
</compile_context>

<pallas_src>
import jax
import jax.numpy as jnp
from jax import lax
from jax.experimental import pallas as pl
from jax.experimental.pallas import tpu as pltpu


# --------------------------------------------------------------------------
# Pallas kernel: fused (alpha+beta) GRU + attention + output projection
# --------------------------------------------------------------------------
def retain_kernel(x_ref,        # [T, E]        visit embeddings (f32)
                  w_h_ref,      # [2E, 7E]      bf16: [W_hh blockdiag (6E) | w_bl rowpad (E)]
                  w_x_ref,      # [E, 6E+Vp]    bf16: [w_xp (6E) | w_out padded (Vp)]
                  b_ref,        # [1, 6E+2E+E+Vp] f32: [b_xp | b_hn | b_bl | b_out]
                  out_ref,      # [1, Vp]
                  h_sc):        # [T, 2E] VMEM scratch: per-step [h_alpha | h_beta]
    T, E = x_ref.shape
    E2, E4, E6 = 2 * E, 4 * E, 6 * E
    wdt = w_x_ref.dtype

    x = x_ref[...]                                            # [T, E] f32
    x_bf = x.astype(wdt)

    # Hoisted input-side projections for BOTH GRUs: one [T,E]x[E,6E] matmul.
    # Gate order on lanes: [r_a r_b z_a z_b | n_a n_b]; input+hidden biases are
    # folded for r/z, the n gate keeps only the input bias (b_hh_n sits inside
    # the r*(...) term below).
    xg = (jnp.dot(x_bf, w_x_ref[:, :E6], preferred_element_type=jnp.float32)
          + b_ref[:, :E6])                                    # [T, 6E] f32

    # Loop-invariant recurrent operands, loaded/sliced once.
    w_hh = w_h_ref[:, :E6]                                    # [2E, 6E] bf16 block-diag
    b_hn = b_ref[:, E6:E6 + E2]                               # [1, 2E]  (b_hh_n a|b)

    # Fully unrolled recurrence over the (small, static) number of visits.
    # Both GRUs advance with a single block-diagonal matmul per step.
    h = jnp.zeros((1, E2), jnp.float32)                       # [h_alpha | h_beta]
    for t in range(T):
        gi = xg[t:t + 1, :]                                   # [1, 6E]
        gh = jnp.dot(h.astype(wdt), w_hh,
                     preferred_element_type=jnp.float32)      # [1, 6E]
        rz = jax.nn.sigmoid(gi[:, :E4] + gh[:, :E4])          # [1, 4E] (one 128-lane tile)
        r = rz[:, :E2]
        z = rz[:, E2:]
        n = jnp.tanh(gi[:, E4:] + r * (gh[:, E4:] + b_hn))    # [1, 2E]
        h = (1.0 - z) * n + z * h
        h_sc[pl.ds(t, 1), :] = h                              # single row store / step

    # ---- Post-loop batched attention + weighted reduction + output projection.
    # attn_g = softmax(alpha_li(g), dim=-1) over a size-1 axis is identically
    # 1.0, so the whole alpha attention block is deleted (exactly mirrors the
    # PyTorch forward; the alpha-GRU state is still advanced above).
    # TODO(synk): if the intended softmax axis is dim=0 (over visits, per the
    # RETAIN paper), reinstate a sublane softmax over T here.
    h_all = h_sc[...]                                         # [T, 2E]
    w_bl = w_h_ref[:, E6:]                                    # [2E, E] (alpha rows zeroed)
    off = E6 + E2
    b_bl = b_ref[:, off:off + E]                              # [1, E]
    b_out = b_ref[:, off + E:]                                # [1, Vp]

    attn_h = jnp.tanh(
        jnp.dot(h_all.astype(wdt), w_bl, preferred_element_type=jnp.float32)
        + b_bl)                                               # [T, E] (uses beta half only)
    c = jnp.sum(attn_h * x, axis=0, keepdims=True)            # [1, E]
    out_ref[...] = (
        jnp.dot(c.astype(wdt), w_x_ref[:, E6:],
                preferred_element_type=jnp.float32) + b_out)  # [1, Vp]


# --------------------------------------------------------------------------
# Host-side weight packing (done ONCE; all forward calls reuse the result)
# --------------------------------------------------------------------------
def pack_retain_params(p, w_dtype=jnp.bfloat16):
    """Pack per-gate GRU/Linear params into 3 fused slabs (+ meta)."""
    E = p["w_ih_a"].shape[1]
    zE = jnp.zeros((E, E), jnp.float32)

    # Input-side projection for both GRUs, gate order [r_a r_b z_a z_b n_a n_b].
    w_xp = jnp.concatenate(
        [p["w_ih_a"][0], p["w_ih_b"][0],
         p["w_ih_a"][1], p["w_ih_b"][1],
         p["w_ih_a"][2], p["w_ih_b"][2]], axis=1)                       # [E, 6E]
    # Fold b_ih+b_hh for r/z; keep only b_ih for n.
    b_xp = jnp.concatenate(
        [p["b_ih_a"][0] + p["b_hh_a"][0], p["b_ih_b"][0] + p["b_hh_b"][0],
         p["b_ih_a"][1] + p["b_hh_a"][1], p["b_ih_b"][1] + p["b_hh_b"][1],
         p["b_ih_a"][2], p["b_ih_b"][2]], axis=1)                       # [1, 6E]

    # Block-diagonal recurrent weights: rows 0:E act on h_alpha, rows E:2E on h_beta.
    w_hh = jnp.concatenate(
        [jnp.concatenate([p["w_hh_a"][0], zE], axis=0),   # r_a
         jnp.concatenate([zE, p["w_hh_b"][0]], axis=0),   # r_b
         jnp.concatenate([p["w_hh_a"][1], zE], axis=0),   # z_a
         jnp.concatenate([zE, p["w_hh_b"][1]], axis=0),   # z_b
         jnp.concatenate([p["w_hh_a"][2], zE], axis=0),   # n_a
         jnp.concatenate([zE, p["w_hh_b"][2]], axis=0)],  # n_b
        axis=1)                                                          # [2E, 6E]
    b_hn = jnp.concatenate([p["b_hh_a"][2], p["b_hh_b"][2]], axis=1)     # [1, 2E]

    # beta_li weight row-padded to 2E so [h_a|h_b] @ w_bl_pad == h_b @ w_bl.
    w_bl_pad = jnp.concatenate([zE, p["w_bl"]], axis=0)                  # [2E, E]

    # Lane-dense output: pad V up to a multiple of 128.
    v_out = p["w_out"].shape[1]
    v_pad = max(128, ((v_out + 127) // 128) * 128)
    w_out = jnp.pad(p["w_out"], ((0, 0), (0, v_pad - v_out)))            # [E, Vp]
    b_out = jnp.pad(p["b_out"], ((0, 0), (0, v_pad - v_out)))            # [1, Vp]

    # Consolidated operands (4 HBM->VMEM DMAs total, incl. x).
    w_h = jnp.concatenate([w_hh, w_bl_pad], axis=1).astype(w_dtype)      # [2E, 7E]
    w_x = jnp.concatenate([w_xp, w_out], axis=1).astype(w_dtype)         # [E, 6E+Vp]
    b = jnp.concatenate([b_xp, b_hn, p["b_bl"], b_out], axis=1)          # [1, 9E+Vp] f32

    return dict(w_h=w_h, w_x=w_x, b=b, v_out=v_out, v_pad=v_pad)


def make_retain_fwd(packed):
    """Build a jitted single-patient forward closed over the packed weights."""
    w_h, w_x, b = packed["w_h"], packed["w_x"], packed["b"]
    v_out, v_pad = packed["v_out"], packed["v_pad"]
    vmem = lambda: pl.BlockSpec(memory_space=pltpu.MemorySpace.VMEM)

    @jax.jit
    def fwd(visit_emb):                      # visit_emb: [T, E] f32
        T, E = visit_emb.shape
        out = pl.pallas_call(
            retain_kernel,
            out_shape=jax.ShapeDtypeStruct((1, v_pad), jnp.float32),
            in_specs=[vmem(), vmem(), vmem(), vmem()],
            out_specs=vmem(),
            scratch_shapes=[pltpu.VMEM((T, 2 * E), jnp.float32)],
        )(visit_emb, w_h, w_x, b)
        return out[:, :v_out]                # strip lane padding

    return fwd


# --------------------------------------------------------------------------
# Pure-JAX reference (same math, unpacked f32 params) for correctness checking
# --------------------------------------------------------------------------
def gru_seq_ref(x_seq, w_ih, w_hh, b_ih, b_hh):
    def step(h, x_t):
        gi_r = x_t @ w_ih[0] + b_ih[0, 0]
        gi_z = x_t @ w_ih[1] + b_ih[1, 0]
        gi_n = x_t @ w_ih[2] + b_ih[2, 0]
        gh_r = h @ w_hh[0] + b_hh[0, 0]
        gh_z = h @ w_hh[1] + b_hh[1, 0]
        gh_n = h @ w_hh[2] + b_hh[2, 0]
        r = jax.nn.sigmoid(gi_r + gh_r)
        z = jax.nn.sigmoid(gi_z + gh_z)
        n = jnp.tanh(gi_n + r * gh_n)
        h_new = (1.0 - z) * n + z * h
        return h_new, h_new

    h0 = jnp.zeros((x_seq.shape[1],), jnp.float32)
    _, hs = lax.scan(step, h0, x_seq)
    return hs  # [T, E]


def retain_ref(visit_emb, p):
    g = gru_seq_ref(visit_emb, p["w_ih_a"], p["w_hh_a"], p["b_ih_a"], p["b_hh_a"])
    h = gru_seq_ref(visit_emb, p["w_ih_b"], p["w_hh_b"], p["b_ih_b"], p["b_hh_b"])
    e_g = jnp.sum(g * p["w_al"], axis=-1, keepdims=True) + p["b_al"]     # [T, 1]
    attn_g = jax.nn.softmax(e_g, axis=-1)                                # [T, 1] == 1
    attn_h = jnp.tanh(h @ p["w_bl"] + p["b_bl"])                         # [T, E]
    c = jnp.sum(attn_g * attn_h * visit_emb, axis=0, keepdims=True)      # [1, E]
    return c @ p["w_out"] + p["b_out"]                                   # [1, V]


# --------------------------------------------------------------------------
if __name__ == "__main__":
    voc_size = (4, 4, 8)
    emb_size = 32
    input_len = sum(voc_size)          # 16
    output_len = voc_size[2]           # 8

    key = jax.random.PRNGKey(0)
    ks = jax.random.split(key, 12)

    def init(k, shape, scale=0.1):
        return jax.random.normal(k, shape, dtype=jnp.float32) * scale

    # nn.Embedding(input_len + 1, emb_size, padding_idx=input_len)
    emb_table = init(ks[0], (input_len + 1, emb_size))
    emb_table = emb_table.at[input_len].set(0.0)   # padding row is zero

    params = dict(
        w_ih_a=init(ks[1], (3, emb_size, emb_size)),
        w_hh_a=init(ks[2], (3, emb_size, emb_size)),
        b_ih_a=init(ks[3], (3, 1, emb_size)),
        b_hh_a=init(ks[4], (3, 1, emb_size)),
        w_ih_b=init(ks[5], (3, emb_size, emb_size)),
        w_hh_b=init(ks[6], (3, emb_size, emb_size)),
        b_ih_b=init(ks[7], (3, 1, emb_size)),
        b_hh_b=init(ks[8], (3, 1, emb_size)),
        w_al=init(ks[9], (1, emb_size)),                 # alpha_li weight [1, E]
        b_al=jnp.zeros((1, 1), jnp.float32),
        w_bl=init(ks[10], (emb_size, emb_size)),         # beta_li weight.T
        b_bl=jnp.zeros((1, emb_size), jnp.float32),
        w_out=init(ks[11], (emb_size, output_len)),      # output weight.T
        b_out=jnp.zeros((1, output_len), jnp.float32),
    )

    # Synthetic patient: 5 visits, each (diagnosis, procedure, medication) codes.
    visits = [
        ([0, 2], [1, 3], [0, 5, 7]),
        ([1], [0, 2], [3]),
        ([3, 2, 0], [1], [6, 2, 4]),
        ([0, 3], [2], [1, 7]),
        ([2], [0, 1, 3], [5]),
    ]
    # Token construction exactly as the PyTorch forward: offset by vocab sizes,
    # pad every visit to max_len with the padding index (= input_len).
    max_len = max(len(d) + len(p) + len(m) for d, p, m in visits)
    rows = []
    for d, p, m in visits:
        toks = (list(d)
                + [c + voc_size[0] for c in p]
                + [c + voc_size[0] + voc_size[1] for c in m])
        toks += [input_len] * (max_len - len(toks))
        rows.append(toks)
    tokens = jnp.asarray(rows, dtype=jnp.int32)          # [T, max_len]

    # Embedding lookup + per-visit sum (host/plain-JAX glue).
    # TODO(synk): nn.Dropout(0.5) is treated as eval-mode identity (no RNG mask).
    visit_emb = jnp.take(emb_table, tokens, axis=0).sum(axis=1)  # [T, E] f32

    # Pack weights ONCE, then build & call the jitted forward.
    packed = pack_retain_params(params)
    retain_fwd = make_retain_fwd(packed)

    out = retain_fwd(visit_emb)
    out = jax.block_until_ready(out)

    ref = retain_ref(visit_emb, params)
    assert out.shape == (1, output_len)
    # bf16 matmul operands -> slightly looser atol than a pure-f32 kernel.
    assert jnp.allclose(out, ref, rtol=2e-2, atol=5e-3), (out, ref)
    print("KERNEL_OK")
</pallas_src>

<mosaic_0001>
module attributes {stable_mosaic.version = 11 : i64} {
  func.func @retain_kernel(%arg0: memref<5x32xf32, #tpu.memory_space<vmem>>, %arg1: memref<64x224xbf16, #tpu.memory_space<vmem>>, %arg2: memref<32x320xbf16, #tpu.memory_space<vmem>>, %arg3: memref<1x416xf32, #tpu.memory_space<vmem>>, %arg4: memref<1x128xf32, #tpu.memory_space<vmem>>, %arg5: memref<5x64xf32, #tpu.memory_space<vmem>>) attributes {dimension_semantics = [], scalar_prefetch = 0 : i64, scratch_operands = 1 : i64, tpu.core_type = #tpu.core_type<tc>} {
    %c0 = arith.constant 0 : index
    %c0_0 = arith.constant 0 : index
    %0 = vector.load %arg0[%c0, %c0_0] : memref<5x32xf32, #tpu.memory_space<vmem>>, vector<5x32xf32>
    %1 = arith.truncf %0 : vector<5x32xf32> to vector<5x32xbf16>
    %c0_1 = arith.constant 0 : index
    %c0_2 = arith.constant 0 : index
    %2 = vector.load %arg2[%c0_1, %c0_2] : memref<32x320xbf16, #tpu.memory_space<vmem>>, vector<32x192xbf16>
    %cst = arith.constant dense<0.000000e+00> : vector<5x192xf32>
    %3 = tpu.matmul %1, %2, %cst {dimension_numbers = #tpu.dot_dimension_numbers<[1], [0], [0], [1], [0, 0, 1, 1], [], []>} : vector<5x32xbf16>, vector<32x192xbf16>, vector<5x192xf32> -> vector<5x192xf32>
    %c0_3 = arith.constant 0 : index
    %c0_4 = arith.constant 0 : index
    %4 = vector.load %arg3[%c0_3, %c0_4] : memref<1x416xf32, #tpu.memory_space<vmem>>, vector<1x192xf32>
    %5 = vector.broadcast %4 : vector<1x192xf32> to vector<5x192xf32>
    %6 = arith.addf %3, %5 : vector<5x192xf32>
    %c0_5 = arith.constant 0 : index
    %c0_6 = arith.constant 0 : index
    %7 = vector.load %arg1[%c0_5, %c0_6] : memref<64x224xbf16, #tpu.memory_space<vmem>>, vector<64x192xbf16>
    %c0_7 = arith.constant 0 : index
    %c192 = arith.constant 192 : index
    %8 = vector.load %arg3[%c0_7, %c192] : memref<1x416xf32, #tpu.memory_space<vmem>>, vector<1x64xf32>
    %cst_8 = arith.constant 0.000000e+00 : f32
    %9 = vector.broadcast %cst_8 : f32 to vector<1x64xf32>
    %10 = vector.extract_strided_slice %6 {offsets = [0, 0], sizes = [1, 192], strides = [1, 1]} : vector<5x192xf32> to vector<1x192xf32>
    %11 = arith.truncf %9 : vector<1x64xf32> to vector<1x64xbf16>
    %cst_9 = arith.constant dense<0.000000e+00> : vector<1x192xf32>
    %12 = tpu.matmul %11, %7, %cst_9 {dimension_numbers = #tpu.dot_dimension_numbers<[1], [0], [0], [1], [0, 0, 1, 1], [], []>} : vector<1x64xbf16>, vector<64x192xbf16>, vector<1x192xf32> -> vector<1x192xf32>
    %13 = vector.extract_strided_slice %10 {offsets = [0, 0], sizes = [1, 128], strides = [1, 1]} : vector<1x192xf32> to vector<1x128xf32>
    %14 = vector.extract_strided_slice %12 {offsets = [0, 0], sizes = [1, 128], strides = [1, 1]} : vector<1x192xf32> to vector<1x128xf32>
    %15 = arith.addf %13, %14 : vector<1x128xf32>
    %16 = arith.negf %15 : vector<1x128xf32>
    %17 = math.exp %16 : vector<1x128xf32>
    %cst_10 = arith.constant 1.000000e+00 : f32
    %18 = vector.broadcast %cst_10 : f32 to vector<1x128xf32>
    %19 = arith.addf %18, %17 : vector<1x128xf32>
    %20 = arith.divf %18, %19 : vector<1x128xf32>
    %21 = vector.extract_strided_slice %20 {offsets = [0, 0], sizes = [1, 64], strides = [1, 1]} : vector<1x128xf32> to vector<1x64xf32>
    %22 = vector.extract_strided_slice %20 {offsets = [0, 64], sizes = [1, 64], strides = [1, 1]} : vector<1x128xf32> to vector<1x64xf32>
    %23 = vector.extract_strided_slice %10 {offsets = [0, 128], sizes = [1, 64], strides = [1, 1]} : vector<1x192xf32> to vector<1x64xf32>
    %24 = vector.extract_strided_slice %12 {offsets = [0, 128], sizes = [1, 64], strides = [1, 1]} : vector<1x192xf32> to vector<1x64xf32>
    %25 = arith.addf %24, %8 : vector<1x64xf32>
    %26 = arith.mulf %21, %25 : vector<1x64xf32>
    %27 = arith.addf %23, %26 : vector<1x64xf32>
    %28 = math.tanh %27 : vector<1x64xf32>
    %cst_11 = arith.constant 1.000000e+00 : f32
    %29 = vector.broadcast %cst_11 : f32 to vector<1x64xf32>
    %30 = arith.subf %29, %22 : vector<1x64xf32>
    %31 = arith.mulf %30, %28 : vector<1x64xf32>
    %32 = arith.mulf %22, %9 : vector<1x64xf32>
    %33 = arith.addf %31, %32 : vector<1x64xf32>
    %c0_12 = arith.constant 0 : index
    %c0_13 = arith.constant 0 : index
    %34 = vector.load %arg5[%c0_12, %c0_13] : memref<5x64xf32, #tpu.memory_space<vmem>>, vector<1x64xf32>
    tpu.vector_store %arg5[%c0_12, %c0_13], %33 {strides = array<i32>} : memref<5x64xf32, #tpu.memory_space<vmem>>, vector<1x64xf32>,
    %35 = vector.extract_strided_slice %6 {offsets = [1, 0], sizes = [1, 192], strides = [1, 1]} : vector<5x192xf32> to vector<1x192xf32>
    %36 = arith.truncf %33 : vector<1x64xf32> to vector<1x64xbf16>
    %cst_14 = arith.constant dense<0.000000e+00> : vector<1x192xf32>
    %37 = tpu.matmul %36, %7, %cst_14 {dimension_numbers = #tpu.dot_dimension_numbers<[1], [0], [0], [1], [0, 0, 1, 1], [], []>} : vector<1x64xbf16>, vector<64x192xbf16>, vector<1x192xf32> -> vector<1x192xf32>
    %38 = vector.extract_strided_slice %35 {offsets = [0, 0], sizes = [1, 128], strides = [1, 1]} : vector<1x192xf32> to vector<1x128xf32>
    %39 = vector.extract_strided_slice %37 {offsets = [0, 0], sizes = [1, 128], strides = [1, 1]} : vector<1x192xf32> to vector<1x128xf32>
    %40 = arith.addf %38, %39 : vector<1x128xf32>
    %41 = arith.negf %40 : vector<1x128xf32>
    %42 = math.exp %41 : vector<1x128xf32>
    %cst_15 = arith.constant 1.000000e+00 : f32
    %43 = vector.broadcast %cst_15 : f32 to vector<1x128xf32>
    %44 = arith.addf %43, %42 : vector<1x128xf32>
    %45 = arith.divf %43, %44 : vector<1x128xf32>
    %46 = vector.extract_strided_slice %45 {offsets = [0, 0], sizes = [1, 64], strides = [1, 1]} : vector<1x128xf32> to vector<1x64xf32>
    %47 = vector.extract_strided_slice %45 {offsets = [0, 64], sizes = [1, 64], strides = [1, 1]} : vector<1x128xf32> to vector<1x64xf32>
    %48 = vector.extract_strided_slice %35 {offsets = [0, 128], sizes = [1, 64], strides = [1, 1]} : vector<1x192xf32> to vector<1x64xf32>
    %49 = vector.extract_strided_slice %37 {offsets = [0, 128], sizes = [1, 64], strides = [1, 1]} : vector<1x192xf32> to vector<1x64xf32>
    %50 = arith.addf %49, %8 : vector<1x64xf32>
    %51 = arith.mulf %46, %50 : vector<1x64xf32>
    %52 = arith.addf %48, %51 : vector<1x64xf32>
    %53 = math.tanh %52 : vector<1x64xf32>
    %cst_16 = arith.constant 1.000000e+00 : f32
    %54 = vector.broadcast %cst_16 : f32 to vector<1x64xf32>
    %55 = arith.subf %54, %47 : vector<1x64xf32>
    %56 = arith.mulf %55, %53 : vector<1x64xf32>
    %57 = arith.mulf %47, %33 : vector<1x64xf32>
    %58 = arith.addf %56, %57 : vector<1x64xf32>
    %c1 = arith.constant 1 : index
    %c0_17 = arith.constant 0 : index
    %59 = vector.load %arg5[%c1, %c0_17] : memref<5x64xf32, #tpu.memory_space<vmem>>, vector<1x64xf32>
    tpu.vector_store %arg5[%c1, %c0_17], %58 {strides = array<i32>} : memref<5x64xf32, #tpu.memory_space<vmem>>, vector<1x64xf32>,
    %60 = vector.extract_strided_slice %6 {offsets = [2, 0], sizes = [1, 192], strides = [1, 1]} : vector<5x192xf32> to vector<1x192xf32>
    %61 = arith.truncf %58 : vector<1x64xf32> to vector<1x64xbf16>
    %cst_18 = arith.constant dense<0.000000e+00> : vector<1x192xf32>
    %62 = tpu.matmul %61, %7, %cst_18 {dimension_numbers = #tpu.dot_dimension_numbers<[1], [0], [0], [1], [0, 0, 1, 1], [], []>} : vector<1x64xbf16>, vector<64x192xbf16>, vector<1x192xf32> -> vector<1x192xf32>
    %63 = vector.extract_strided_slice %60 {offsets = [0, 0], sizes = [1, 128], strides = [1, 1]} : vector<1x192xf32> to vector<1x128xf32>
    %64 = vector.extract_strided_slice %62 {offsets = [0, 0], sizes = [1, 128], strides = [1, 1]} : vector<1x192xf32> to vector<1x128xf32>
    %65 = arith.addf %63, %64 : vector<1x128xf32>
    %66 = arith.negf %65 : vector<1x128xf32>
    %67 = math.exp %66 : vector<1x128xf32>
    %cst_19 = arith.constant 1.000000e+00 : f32
    %68 = vector.broadcast %cst_19 : f32 to vector<1x128xf32>
    %69 = arith.addf %68, %67 : vector<1x128xf32>
    %70 = arith.divf %68, %69 : vector<1x128xf32>
    %71 = vector.extract_strided_slice %70 {offsets = [0, 0], sizes = [1, 64], strides = [1, 1]} : vector<1x128xf32> to vector<1x64xf32>
    %72 = vector.extract_strided_slice %70 {offsets = [0, 64], sizes = [1, 64], strides = [1, 1]} : vector<1x128xf32> to vector<1x64xf32>
    %73 = vector.extract_strided_slice %60 {offsets = [0, 128], sizes = [1, 64], strides = [1, 1]} : vector<1x192xf32> to vector<1x64xf32>
    %74 = vector.extract_strided_slice %62 {offsets = [0, 128], sizes = [1, 64], strides = [1, 1]} : vector<1x192xf32> to vector<1x64xf32>
    %75 = arith.addf %74, %8 : vector<1x64xf32>
    %76 = arith.mulf %71, %75 : vector<1x64xf32>
    %77 = arith.addf %73, %76 : vector<1x64xf32>
    %78 = math.tanh %77 : vector<1x64xf32>
    %cst_20 = arith.constant 1.000000e+00 : f32
    %79 = vector.broadcast %cst_20 : f32 to vector<1x64xf32>
    %80 = arith.subf %79, %72 : vector<1x64xf32>
    %81 = arith.mulf %80, %78 : vector<1x64xf32>
    %82 = arith.mulf %72, %58 : vector<1x64xf32>
    %83 = arith.addf %81, %82 : vector<1x64xf32>
    %c2 = arith.constant 2 : index
    %c0_21 = arith.constant 0 : index
    %84 = vector.load %arg5[%c2, %c0_21] : memref<5x64xf32, #tpu.memory_space<vmem>>, vector<1x64xf32>
    tpu.vector_store %arg5[%c2, %c0_21], %83 {strides = array<i32>} : memref<5x64xf32, #tpu.memory_space<vmem>>, vector<1x64xf32>,
    %85 = vector.extract_strided_slice %6 {offsets = [3, 0], sizes = [1, 192], strides = [1, 1]} : vector<5x192xf32> to vector<1x192xf32>
    %86 = arith.truncf %83 : vector<1x64xf32> to vector<1x64xbf16>
    %cst_22 = arith.constant dense<0.000000e+00> : vector<1x192xf32>
    %87 = tpu.matmul %86, %7, %cst_22 {dimension_numbers = #tpu.dot_dimension_numbers<[1], [0], [0], [1], [0, 0, 1, 1], [], []>} : vector<1x64xbf16>, vector<64x192xbf16>, vector<1x192xf32> -> vector<1x192xf32>
    %88 = vector.extract_strided_slice %85 {offsets = [0, 0], sizes = [1, 128], strides = [1, 1]} : vector<1x192xf32> to vector<1x128xf32>
    %89 = vector.extract_strided_slice %87 {offsets = [0, 0], sizes = [1, 128], strides = [1, 1]} : vector<1x192xf32> to vector<1x128xf32>
    %90 = arith.addf %88, %89 : vector<1x128xf32>
    %91 = arith.negf %90 : vector<1x128xf32>
    %92 = math.exp %91 : vector<1x128xf32>
    %cst_23 = arith.constant 1.000000e+00 : f32
    %93 = vector.broadcast %cst_23 : f32 to vector<1x128xf32>
    %94 = arith.addf %93, %92 : vector<1x128xf32>
    %95 = arith.divf %93, %94 : vector<1x128xf32>
    %96 = vector.extract_strided_slice %95 {offsets = [0, 0], sizes = [1, 64], strides = [1, 1]} : vector<1x128xf32> to vector<1x64xf32>
    %97 = vector.extract_strided_slice %95 {offsets = [0, 64], sizes = [1, 64], strides = [1, 1]} : vector<1x128xf32> to vector<1x64xf32>
    %98 = vector.extract_strided_slice %85 {offsets = [0, 128], sizes = [1, 64], strides = [1, 1]} : vector<1x192xf32> to vector<1x64xf32>
    %99 = vector.extract_strided_slice %87 {offsets = [0, 128], sizes = [1, 64], strides = [1, 1]} : vector<1x192xf32> to vector<1x64xf32>
    %100 = arith.addf %99, %8 : vector<1x64xf32>
    %101 = arith.mulf %96, %100 : vector<1x64xf32>
    %102 = arith.addf %98, %101 : vector<1x64xf32>
    %103 = math.tanh %102 : vector<1x64xf32>
    %cst_24 = arith.constant 1.000000e+00 : f32
    %104 = vector.broadcast %cst_24 : f32 to vector<1x64xf32>
    %105 = arith.subf %104, %97 : vector<1x64xf32>
    %106 = arith.mulf %105, %103 : vector<1x64xf32>
    %107 = arith.mulf %97, %83 : vector<1x64xf32>
    %108 = arith.addf %106, %107 : vector<1x64xf32>
    %c3 = arith.constant 3 : index
    %c0_25 = arith.constant 0 : index
    %109 = vector.load %arg5[%c3, %c0_25] : memref<5x64xf32, #tpu.memory_space<vmem>>, vector<1x64xf32>
    tpu.vector_store %arg5[%c3, %c0_25], %108 {strides = array<i32>} : memref<5x64xf32, #tpu.memory_space<vmem>>, vector<1x64xf32>,
    %110 = vector.extract_strided_slice %6 {offsets = [4, 0], sizes = [1, 192], strides = [1, 1]} : vector<5x192xf32> to vector<1x192xf32>
    %111 = arith.truncf %108 : vector<1x64xf32> to vector<1x64xbf16>
    %cst_26 = arith.constant dense<0.000000e+00> : vector<1x192xf32>
    %112 = tpu.matmul %111, %7, %cst_26 {dimension_numbers = #tpu.dot_dimension_numbers<[1], [0], [0], [1], [0, 0, 1, 1], [], []>} : vector<1x64xbf16>, vector<64x192xbf16>, vector<1x192xf32> -> vector<1x192xf32>
    %113 = vector.extract_strided_slice %110 {offsets = [0, 0], sizes = [1, 128], strides = [1, 1]} : vector<1x192xf32> to vector<1x128xf32>
    %114 = vector.extract_strided_slice %112 {offsets = [0, 0], sizes = [1, 128], strides = [1, 1]} : vector<1x192xf32> to vector<1x128xf32>
    %115 = arith.addf %113, %114 : vector<1x128xf32>
    %116 = arith.negf %115 : vector<1x128xf32>
    %117 = math.exp %116 : vector<1x128xf32>
    %cst_27 = arith.constant 1.000000e+00 : f32
    %118 = vector.broadcast %cst_27 : f32 to vector<1x128xf32>
    %119 = arith.addf %118, %117 : vector<1x128xf32>
    %120 = arith.divf %118, %119 : vector<1x128xf32>
    %121 = vector.extract_strided_slice %120 {offsets = [0, 0], sizes = [1, 64], strides = [1, 1]} : vector<1x128xf32> to vector<1x64xf32>
    %122 = vector.extract_strided_slice %120 {offsets = [0, 64], sizes = [1, 64], strides = [1, 1]} : vector<1x128xf32> to vector<1x64xf32>
    %123 = vector.extract_strided_slice %110 {offsets = [0, 128], sizes = [1, 64], strides = [1, 1]} : vector<1x192xf32> to vector<1x64xf32>
    %124 = vector.extract_strided_slice %112 {offsets = [0, 128], sizes = [1, 64], strides = [1, 1]} : vector<1x192xf32> to vector<1x64xf32>
    %125 = arith.addf %124, %8 : vector<1x64xf32>
    %126 = arith.mulf %121, %125 : vector<1x64xf32>
    %127 = arith.addf %123, %126 : vector<1x64xf32>
    %128 = math.tanh %127 : vector<1x64xf32>
    %cst_28 = arith.constant 1.000000e+00 : f32
    %129 = vector.broadcast %cst_28 : f32 to vector<1x64xf32>
    %130 = arith.subf %129, %122 : vector<1x64xf32>
    %131 = arith.mulf %130, %128 : vector<1x64xf32>
    %132 = arith.mulf %122, %108 : vector<1x64xf32>
    %133 = arith.addf %131, %132 : vector<1x64xf32>
    %c4 = arith.constant 4 : index
    %c0_29 = arith.constant 0 : index
    %134 = vector.load %arg5[%c4, %c0_29] : memref<5x64xf32, #tpu.memory_space<vmem>>, vector<1x64xf32>
    tpu.vector_store %arg5[%c4, %c0_29], %133 {strides = array<i32>} : memref<5x64xf32, #tpu.memory_space<vmem>>, vector<1x64xf32>,
    %c0_30 = arith.constant 0 : index
    %c0_31 = arith.constant 0 : index
    %135 = vector.load %arg5[%c0_30, %c0_31] : memref<5x64xf32, #tpu.memory_space<vmem>>, vector<5x64xf32>
    %c0_32 = arith.constant 0 : index
    %c192_33 = arith.constant 192 : index
    %136 = vector.load %arg1[%c0_32, %c192_33] : memref<64x224xbf16, #tpu.memory_space<vmem>>, vector<64x32xbf16>
    %c0_34 = arith.constant 0 : index
    %c256 = arith.constant 256 : index
    %137 = vector.load %arg3[%c0_34, %c256] : memref<1x416xf32, #tpu.memory_space<vmem>>, vector<1x32xf32>
    %c0_35 = arith.constant 0 : index
    %c288 = arith.constant 288 : index
    %138 = vector.load %arg3[%c0_35, %c288] : memref<1x416xf32, #tpu.memory_space<vmem>>, vector<1x128xf32>
    %139 = arith.truncf %135 : vector<5x64xf32> to vector<5x64xbf16>
    %cst_36 = arith.constant dense<0.000000e+00> : vector<5x32xf32>
    %140 = tpu.matmul %139, %136, %cst_36 {dimension_numbers = #tpu.dot_dimension_numbers<[1], [0], [0], [1], [0, 0, 1, 1], [], []>} : vector<5x64xbf16>, vector<64x32xbf16>, vector<5x32xf32> -> vector<5x32xf32>
    %141 = vector.broadcast %137 : vector<1x32xf32> to vector<5x32xf32>
    %142 = arith.addf %140, %141 : vector<5x32xf32>
    %143 = math.tanh %142 : vector<5x32xf32>
    %144 = arith.mulf %143, %0 : vector<5x32xf32>
    %cst_37 = arith.constant dense<0.000000e+00> : vector<32xf32>
    %145 = vector.multi_reduction <add>, %144, %cst_37 [0] : vector<5x32xf32> to vector<32xf32>
    %146 = vector.shape_cast %145 : vector<32xf32> to vector<1x32xf32>
    %147 = arith.truncf %146 : vector<1x32xf32> to vector<1x32xbf16>
    %c0_38 = arith.constant 0 : index
    %c192_39 = arith.constant 192 : index
    %148 = vector.load %arg2[%c0_38, %c192_39] : memref<32x320xbf16, #tpu.memory_space<vmem>>, vector<32x128xbf16>
    %cst_40 = arith.constant dense<0.000000e+00> : vector<1x128xf32>
    %149 = tpu.matmul %147, %148, %cst_40 {dimension_numbers = #tpu.dot_dimension_numbers<[1], [0], [0], [1], [0, 0, 1, 1], [], []>} : vector<1x32xbf16>, vector<32x128xbf16>, vector<1x128xf32> -> vector<1x128xf32>
    %150 = arith.addf %149, %138 : vector<1x128xf32>
    %c0_41 = arith.constant 0 : index
    %c0_42 = arith.constant 0 : index
    %151 = vector.load %arg4[%c0_41, %c0_42] : memref<1x128xf32, #tpu.memory_space<vmem>>, vector<1x128xf32>
    tpu.vector_store %arg4[%c0_41, %c0_42], %150 {strides = array<i32>} : memref<1x128xf32, #tpu.memory_space<vmem>>, vector<1x128xf32>,
    return
  }
}

</mosaic_0001>

<bundles_post_ra>
// kernel: fwd.1
= control target key start
LH: loop header
LB: loop body
LE: loop exit
PB: predicated region body
PF: predicated region fallthrough
CT: control target
= control target key end

     0   :  { %9 = vsyncpa [#allocation4], 0  ;;  %s1232_s0 = inlined_call_operand.hbm [shape: f32[5,32], index: 0, kind: input, shape index: {}]   ;;  %s1233_s1 = inlined_call_operand.hbm [shape: bf16[64,224], index: 1, kind: input, shape index: {}]   ;;  %s1234_s2 = inlined_call_operand.hbm [shape: bf16[32,320], index: 2, kind: input, shape index: {}]   ;;  %s1235_s3 = inlined_call_operand.vmem [shape: f32[1,416], index: 3, kind: input, shape index: {}]   ;;  %s1236_s4 = inlined_call_operand.hbm [shape: f32[1,128], index: 4, kind: output, shape index: {}]  }
   0x1   :  { %10 = vsyncpa [#allocation7], 0 }
   0x2   :  { %11 = vsyncpa [#allocation5], 0  ;;  %s1032_s15 = smov [#allocation6]  }
   0x3   :  { %s27_s16 = sshll.u32 %s1032_s15, 4  ;;  %s28_s16 = int_to_ptr.vmem [resolvable:$true] %s27_s16 }
   0x4   :  { %s954_s17 = scalar_lea.vmem %s28_s16, 1024  ;;  %p959_p1 = scmp.lt.s32.totalorder %s28_s16, %s28_s16 }
   0x5   :  { %p955_p0 = scmp.ne.s32.totalorder %s28_s16, %s954_s17  ;;  %p960_p2 = scmp.lt.s32.totalorder %s954_s17, %s954_s17 }
   0x7   :  { %p961_p3 = por %p960_p2, %p959_p1 }
   0x9   :  { %p962_p4 = pnand %p961_p3, %p955_p0 }
   0xb   :  { %965 = shalt.err (!%p962_p4)
}
   0xc   :  { %s1033_s18 = smov 128   ;;  %s1034_s19 = smov 8  }
   0xd   :  { %33 = dma.hbm_to_vmem [thread:$0]  %s1233_s1, 1024, %s28_s16, [#allocation7], %s1033_s18, %s1033_s18, %s1034_s19  }
   0xe   :  { %s1035_s22 = smov [#allocation3]   ;;  %s1036_s24 = smov [#allocation8]  }
   0xf   :  { %s18_s23 = sshll.u32 %s1035_s22, 4  ;;  %s39_s25 = sshll.u32 %s1036_s24, 4  ;;  %s19_s23 = int_to_ptr.vmem [resolvable:$true] %s18_s23  ;;  %s40_s25 = int_to_ptr.vmem [resolvable:$true] %s39_s25 }
  0x10   :  { %s974_s26 = scalar_lea.vmem %s19_s23, 128  ;;  %p979_p6 = scmp.lt.s32.totalorder %s19_s23, %s19_s23 }
  0x11   :  { %p975_p5 = scmp.ne.s32.totalorder %s19_s23, %s974_s26  ;;  %p980_p7 = scmp.lt.s32.totalorder %s974_s26, %s974_s26 }
  0x13   :  { %p981_p8 = por %p980_p7, %p979_p6 }
  0x15   :  { %p982_p9 = pnand %p981_p8, %p975_p5 }
  0x17   :  { %985 = shalt.err (!%p982_p9)
}
  0x18   :  { %21 = dma.hbm_to_vmem [thread:$0]  %s1232_s0, 128, %s19_s23, [#allocation4]  }
  0x19   :  { %s994_s29 = scalar_lea.vmem %s40_s25, 768  ;;  %p999_p11 = scmp.lt.s32.totalorder %s40_s25, %s40_s25 }
  0x1a   :  { %p995_p10 = scmp.ne.s32.totalorder %s40_s25, %s994_s29  ;;  %p1000_p12 = scmp.lt.s32.totalorder %s994_s29, %s994_s29 }
  0x1c   :  { %p1001_p13 = por %p1000_p12, %p999_p11 }
  0x1e   :  { %p1002_p0 = pnand %p1001_p13, %p995_p10 }
  0x20   :  { %1005 = shalt.err (!%p1002_p0)
}
  0x21   :  { %s1037_s1 = smov 192   ;;  %s1038_s30 = smov 12  }
  0x22   :  { %45 = dma.hbm_to_vmem [thread:$0]  %s1234_s2, 768, %s40_s25, [#allocation7], %s1037_s1, %s1037_s1, %s1038_s30  }
  0x23   :  { %1026 = dma.done.wait [#allocation4], 128  }
  0x24   :  { %1027 = vsyncadd [#allocation4], 4294967168 }
  0x25   :  { %1028 = dma.done.wait [#allocation7], 1792  }
  0x26   :  { %1029 = vsyncadd [#allocation7], 4294965504  ;;  %v1039_v0 = vmov 0   ;;  %v886_v1 = vld [vmem:[#allocation8 + $0x1c] ss:$12 sps:$4 sm:$0xff]   ;;  %vm96_vm0 = vcmask 261120   ;;  %v66_v16 = vlaneseq }
  0x27   :  { %132 = vmatprep.mubr.bf16.mxu0 %v1039_v0  ;;  %226 = vmatprep.mubr.bf16.mxu1 %v1039_v0  ;;  %v888_v2 = vld [vmem:[#allocation6 + $0x34] ss:$8 sps:$4 sm:$0xff]   ;;  %v890_v3 = vld [vmem:[#allocation8 + $0x18] ss:$12 sps:$4 sm:$0xff]   ;;  %v896_v7 = vld [vmem:[#allocation8] ss:$12 sps:$4 sm:$0xff]  }
  0x28   :  { %112 = vmatprep.subr.bf16.mxu0 %v886_v1  ;;  %v1081_v4 = vld [vmem:[#allocation6 + $0x30] ss:$8 sps:$4 sm:$0xff]   ;;  %202 = vmatprep.subr.bf16.mxu1 %v888_v2  ;;  %v1084_v6 = vld [vmem:[#allocation6 + $0x24] ss:$8 sps:$4 sm:$0xff]   ;;  %v1086_v8 = vld [vmem:[#allocation6 + $0x20] ss:$8 sps:$4 sm:$0xff]  }
  0x29   :  { %v892_v5 = vld [vmem:[#allocation8 + $0x4] ss:$12 sps:$4 sm:$0xff]   ;;  %113 = vmatpush1.bf16.msra.mxu0 %v890_v3  ;;  %203 = vmatpush1.bf16.msra.mxu1 %v1081_v4  ;;  %v1088_v9 = vld [vmem:[#allocation3] sm:$0x1f]  ;;  %s1040_s7 = smov 64   ;;  %v1128_v17 = vshrl.u32 %v66_v16, 7 }
  0x2a   :  { %114 = vmatprep.subr.bf16.mxu0 %v892_v5  ;;  %204 = vmatprep.subr.bf16.mxu1 %v1084_v6  ;;  %v1091_v10 = vld [vmem:[#allocation6 + $0x14] ss:$8 sps:$4 sm:$0xff]   ;;  %v59_v11 = vpack.c.bf16 %v1088_v9, %v1088_v9  ;;  %v1096_v12 = vld [vmem:[#allocation6 + $0x10] ss:$8 sps:$4 sm:$0xff]   ;;  %v1098_v13 = vld [vmem:[#allocation6 + $0x4] ss:$8 sps:$4 sm:$0xff]  }
  0x2b   :  { %v825_v14 = vld [vmem:[%s1235_s3 + $0x1] ss:$0 sm:$0xff]  ;;  %v1105_v15 = vld [vmem:[#allocation6] ss:$8 sps:$4 sm:$0xff]   ;;  %v68_v18 = vsub.s32 0, %v1128_v17  ;;  %v72_v34 = vsub.s32 1, %v1128_v17 }
  0x2c   :  { %247 = vrot.lane.b32.xlu0 %v825_v14, %s1040_s7  ;;  %v64_v19 = vld [vmem:[%s1235_s3] sm:$0x3]  ;;  %vm190_vm1 = vcmask 523264   ;;  %vm266_vm2 = vcmask 516096   ;;  %vm430_vm3 = vcmask 518146   ;;  %vm1042_vm4 = vmmov 0  }
  0x2d   :  { %115 = vmatpush1.bf16.msra.mxu0 %v896_v7  ;;  %205 = vmatpush1.bf16.msra.mxu1 %v1086_v8  ;;  %v69_v21 = vrot.slane %v64_v19, %v68_v18  ;;  %v73_v36 = vrot.slane %v64_v19, %v72_v34  ;;  %vm347_vm5 = vcmask 517121   ;;  %vm512_vm6 = vcmask 519171   ;;  %s1043_s12 = smov 96  }
  0x2e   :  { %206 = vmatprep.subr.bf16.mxu1 %v1091_v10  ;;  %283 = vmatprep.subr.bf16.mxu0 %v888_v2  ;;  %vm596_vm7 = vcmask 520196   ;;  %vm693_vm8 = vcmask 258048   ;;  %vm748_vm9 = vcmask 785408  }
  0x30   :  { %815 = vmatmul.mubr.msk.bf16.vlgmr.msra.gmra.mxu0 %vm96_vm0, %v59_v11 }
  0x31   :  { %207 = vmatpush1.bf16.msra.mxu1 %v1096_v12  ;;  %284 = vmatpush1.bf16.msra.mxu0 %v1081_v4 }
  0x32   :  { %208 = vmatprep.subr.bf16.mxu1 %v1098_v13  ;;  %285 = vmatprep.subr.bf16.mxu0 %v1084_v6 }
  0x33   :  { %307 = vmatprep.mubr.bf16.mxu0 %v1039_v0 }
  0x35   :  { %209 = vmatpush1.bf16.msra.mxu1 %v1105_v15  ;;  %286 = vmatpush1.bf16.msra.mxu0 %v1086_v8 }
  0x36   :  { %287 = vmatprep.subr.bf16.mxu0 %v1091_v10  ;;  %366 = vmatprep.subr.bf16.mxu1 %v888_v2 }
  0x38   :  { %227 = vmatmul.mubr.bf16.vlgmr.msra.gmra.mxu1 %v1039_v0 }
  0x39   :  { %288 = vmatpush1.bf16.msra.mxu0 %v1096_v12  ;;  %367 = vmatpush1.bf16.msra.mxu1 %v1081_v4 }
  0x3a   :  { %289 = vmatprep.subr.bf16.mxu0 %v1098_v13  ;;  %368 = vmatprep.subr.bf16.mxu1 %v1084_v6 }
  0x3b   :  { %390 = vmatprep.mubr.bf16.mxu1 %v1039_v0 }
  0x3d   :  { %290 = vmatpush1.bf16.msra.mxu0 %v1105_v15  ;;  %369 = vmatpush1.bf16.msra.mxu1 %v1086_v8 }
  0x3e   :  { %370 = vmatprep.subr.bf16.mxu1 %v1091_v10  ;;  %448 = vmatprep.subr.bf16.mxu0 %v888_v2 }
  0x41   :  { %371 = vmatpush1.bf16.msra.mxu1 %v1096_v12 }
  0x42   :  { %372 = vmatprep.subr.bf16.mxu1 %v1098_v13 }
  0x45   :  { %373 = vmatpush1.bf16.msra.mxu1 %v1105_v15 }
  0x46   :  { %532 = vmatprep.subr.bf16.mxu1 %v888_v2 }
  0x9e   :  { %v1140_v35 = vpop.permute.xlu0 %247 }
  0xf0   :  { %v134_v20 = vpop.f32.mrf.mxu0 }
  0xf1   :  { %v1136_v24 = vadd.f32 %v134_v20, %v69_v21 }
  0xf2   :  { %v136_v22 = vpop.f32.mrf.mxu0 }
  0xf3   :  { %v1145_v39 = vadd.f32 %v136_v22, %v73_v36 }
  0xf4   :  { %v138_v23 = vpop.f32.mrf.mxu0 }
  0xf6   :  { %v139_v25 = vpop.f32.mrf.mxu0 }
  0xf8   :  { %v228_v26 = vpop.f32.mrf.mxu1 }
  0xf9   :  { %v235_v27 = vadd.f32 %v228_v26, %v1136_v24 }
  0xfa   :  { %v230_v28 = vpop.f32.mrf.mxu1 }
  0xfb   :  { %v824_v29 = vmul.f32 -1.442695, %v235_v27  ;;  %v250_v37 = vadd.f32 %v1140_v35, %v230_v28 }
  0xfc   :  { %v232_v30 = vpop.f32.mrf.mxu1 }
  0xfd   :  { %914 = vpow2.f32 %v824_v29 }
  0xfe   :  { %v233_v31 = vpop.f32.mrf.mxu1 }
 0x10a   :  { %v915_v32 = vpop.eup %914 }
 0x10b   :  { %v239_v33 = vadd.f32 1.0, %v915_v32 }
 0x10d   :  { %916 = vrcp.f32 %v239_v33 }
 0x11a   :  { %v917_v38 = vpop.eup %916 }
 0x11b   :  { %v251_v40 = vmul.f32 %v917_v38, %v250_v37  ;;  %v254_v43 = vsub.f32 1.0, %v917_v38  ;;  %v260_v45 = vmul.f32 0.0, %v917_v38 }
 0x11d   :  { %v252_v41 = vadd.f32 %v251_v40, %v1145_v39 }
 0x11f   :  { %918 = vtanh.f32 %v252_v41 }
 0x12c   :  { %v919_v42 = vpop.eup %918 }
 0x12d   :  { %256 = vrot.lane.b32.xlu0 %v919_v42, %s1040_s7 }
 0x19f   :  { %v257_v44 = vpop.permute.xlu0 %256 }
 0x1a0   :  { %v259_v46 = vmul.f32 %v257_v44, %v254_v43 }
 0x1a2   :  { %v1149_v47 = vadd.f32 %v260_v45, %v259_v46 }
 0x1a4   :  { %v268_v48 = vpack.c.bf16 %v1149_v47, %v1149_v47  ;;  %v339_v3 = vrot.slane %v1149_v47, 7 }
 0x1a6   :  { %270 = vrot.lane.b32.xlu1 %v268_v48, %s1040_s7 }
 0x218   :  { %v271_v49 = vpop.permute.xlu1 %270 }
 0x219   :  { %826 = vmatmul.mubr.msk.bf16.vlgmr.msra.gmra.mxu0 %vm190_vm1, %v271_v49 }
 0x21a   :  { %449 = vmatpush1.bf16.msra.mxu0 %v1081_v4  ;;  %472 = vmatprep.mubr.bf16.mxu0 %v1039_v0 }
 0x21b   :  { %450 = vmatprep.subr.bf16.mxu0 %v1084_v6 }
 0x21e   :  { %451 = vmatpush1.bf16.msra.mxu0 %v1086_v8 }
 0x21f   :  { %452 = vmatprep.subr.bf16.mxu0 %v1091_v10 }
 0x222   :  { %453 = vmatpush1.bf16.msra.mxu0 %v1096_v12 }
 0x223   :  { %454 = vmatprep.subr.bf16.mxu0 %v1098_v13 }
 0x226   :  { %455 = vmatpush1.bf16.msra.mxu0 %v1105_v15 }
 0x2d9   :  { %v309_v50 = vpop.f32.mrf.mxu0 }
 0x2da   :  { %v317_v51 = vrot.slane %v309_v50, 7 }
 0x2db   :  { %v311_v52 = vpop.f32.mrf.mxu0 }
 0x2dc   :  { %v319_v53 = vadd.f32 %v317_v51, %v1136_v24  ;;  %v326_v59 = vadd.f32 %v311_v52, %v1140_v35 }
 0x2dd   :  { %v313_v54 = vpop.f32.mrf.mxu0 }
 0x2de   :  { %v827_v55 = vmul.f32 -1.442695, %v319_v53  ;;  %v328_v60 = vrot.slane %v326_v59, 7 }
 0x2df   :  { %v314_v56 = vpop.f32.mrf.mxu0 }
 0x2e0   :  { %920 = vpow2.f32 %v827_v55 }
 0x2ed   :  { %v921_v57 = vpop.eup %920 }
 0x2ee   :  { %v323_v58 = vadd.f32 1.0, %v921_v57 }
 0x2f0   :  { %922 = vrcp.f32 %v323_v58 }
 0x2fd   :  { %v923_v61 = vpop.eup %922 }
 0x2fe   :  { %v330_v62 = vmul.f32 %v923_v61, %v328_v60  ;;  %v333_v2 = vsub.f32 1.0, %v923_v61  ;;  %v341_v7 = vmul.f32 %v923_v61, %v339_v3  ;;  %v904_v3 = vld [vmem:[#allocation6 + $0x34] ss:$8 sps:$4 sm:$0xff]  }
 0x300   :  { %v331_v63 = vadd.f32 %v330_v62, %v1145_v39 }
 0x302   :  { %924 = vtanh.f32 %v331_v63 }
 0x30f   :  { %v925_v1 = vpop.eup %924 }
 0x310   :  { %335 = vrot.lane.b32.xlu1 %v925_v1, %s1040_s7 }
 0x382   :  { %v336_v5 = vpop.permute.xlu1 %335 }
 0x383   :  { %v338_v11 = vmul.f32 %v336_v5, %v333_v2 }
 0x385   :  { %v1168_v14 = vadd.f32 %v341_v7, %v338_v11 }
 0x387   :  { %v349_v16 = vpack.c.bf16 %v1168_v14, %v1168_v14  ;;  %v422_v30 = vrot.slane %v1168_v14, 7 }
 0x389   :  { %v351_v19 = vshrl.u32 %v349_v16, 16 }
 0x38b   :  { %353 = vrot.lane.b32.xlu0 %v351_v19, %s1040_s7 }
 0x3fd   :  { %v354_v20 = vpop.permute.xlu0 %353 }
 0x3fe   :  { %828 = vmatmul.mubr.msk.bf16.vlgmr.msra.gmra.mxu1 %vm190_vm1, %v354_v20 }
 0x3ff   :  { %533 = vmatpush1.bf16.msra.mxu1 %v1081_v4  ;;  %556 = vmatprep.mubr.bf16.mxu1 %v1039_v0 }
 0x400   :  { %534 = vmatprep.subr.bf16.mxu1 %v1084_v6 }
 0x403   :  { %535 = vmatpush1.bf16.msra.mxu1 %v1086_v8 }
 0x404   :  { %536 = vmatprep.subr.bf16.mxu1 %v1091_v10 }
 0x407   :  { %537 = vmatpush1.bf16.msra.mxu1 %v1096_v12 }
 0x408   :  { %538 = vmatprep.subr.bf16.mxu1 %v1098_v13 }
 0x40b   :  { %539 = vmatpush1.bf16.msra.mxu1 %v1105_v15 }
 0x4be   :  { %v392_v21 = vpop.f32.mrf.mxu1 }
 0x4bf   :  { %v400_v22 = vrot.slane %v392_v21, 6 }
 0x4c0   :  { %v394_v23 = vpop.f32.mrf.mxu1 }
 0x4c1   :  { %v402_v25 = vadd.f32 %v400_v22, %v1136_v24  ;;  %v409_v8 = vadd.f32 %v394_v23, %v1140_v35 }
 0x4c2   :  { %v396_v4 = vpop.f32.mrf.mxu1 }
 0x4c3   :  { %v829_v26 = vmul.f32 -1.442695, %v402_v25  ;;  %v411_v10 = vrot.slane %v409_v8, 6 }
 0x4c4   :  { %v397_v0 = vpop.f32.mrf.mxu1 }
 0x4c5   :  { %926 = vpow2.f32 %v829_v26 }
 0x4d2   :  { %v927_v6 = vpop.eup %926 }
 0x4d3   :  { %v406_v27 = vadd.f32 1.0, %v927_v6 }
 0x4d5   :  { %928 = vrcp.f32 %v406_v27 }
 0x4e2   :  { %v929_v12 = vpop.eup %928 }
 0x4e3   :  { %v413_v28 = vmul.f32 %v929_v12, %v411_v10  ;;  %v416_v29 = vsub.f32 1.0, %v929_v12  ;;  %v424_v32 = vmul.f32 %v929_v12, %v422_v30 }
 0x4e5   :  { %v414_v13 = vadd.f32 %v413_v28, %v1145_v39  ;;  %v905_v28 = vld [vmem:[#allocation6 + $0x24] ss:$8 sps:$4 sm:$0xff]  }
 0x4e7   :  { %930 = vtanh.f32 %v414_v13 }
 0x4f4   :  { %v931_v15 = vpop.eup %930 }
 0x4f5   :  { %418 = vrot.lane.b32.xlu1 %v931_v15, %s1040_s7 }
 0x567   :  { %v419_v31 = vpop.permute.xlu1 %418 }
 0x568   :  { %v421_v33 = vmul.f32 %v419_v31, %v416_v29  ;;  %v908_v31 = vld [vmem:[#allocation8 + $0x1c] ss:$12 sps:$4 sm:$0xff]  }
 0x56a   :  { %v425_v36 = vadd.f32 %v424_v32, %v421_v33 }
 0x56c   :  { %v432_v37 = vpack.c.bf16 %v425_v36, %v425_v36  ;;  %v504_v58 = vrot.slane %v425_v36, 7 }
 0x56e   :  { %v434_v38 = vrot.slane %v432_v37, 1 }
 0x570   :  { %435 = vrot.lane.b32.xlu0 %v434_v38, %s1040_s7  ;;  %v910_v38 = vld [vmem:[#allocation8 + $0x20] ss:$12 sps:$4 sm:$0xff]  }
 0x5e2   :  { %v436_v40 = vpop.permute.xlu0 %435 }
 0x5e3   :  { %830 = vmatmul.mubr.msk.bf16.vlgmr.msra.gmra.mxu0 %vm190_vm1, %v436_v40 }
 0x6a3   :  { %v474_v41 = vpop.f32.mrf.mxu0 }
 0x6a4   :  { %v482_v42 = vrot.slane %v474_v41, 5  ;;  %v913_v41 = vld [vmem:[#allocation8 + $0x8] ss:$12 sps:$4 sm:$0xff]  }
 0x6a5   :  { %v476_v43 = vpop.f32.mrf.mxu0 }
 0x6a6   :  { %v484_v44 = vadd.f32 %v482_v42, %v1136_v24  ;;  %v491_v51 = vadd.f32 %v476_v43, %v1140_v35 }
 0x6a7   :  { %v478_v45 = vpop.f32.mrf.mxu0 }
 0x6a8   :  { %v831_v46 = vmul.f32 -1.442695, %v484_v44  ;;  %v493_v52 = vrot.slane %v491_v51, 5 }
 0x6a9   :  { %v479_v48 = vpop.f32.mrf.mxu0 }
 0x6aa   :  { %932 = vpow2.f32 %v831_v46 }
 0x6b7   :  { %v933_v49 = vpop.eup %932 }
 0x6b8   :  { %v488_v50 = vadd.f32 1.0, %v933_v49 }
 0x6ba   :  { %934 = vrcp.f32 %v488_v50 }
 0x6c7   :  { %v935_v53 = vpop.eup %934 }
 0x6c8   :  { %v495_v54 = vmul.f32 %v935_v53, %v493_v52  ;;  %v498_v57 = vsub.f32 1.0, %v935_v53  ;;  %v506_v60 = vmul.f32 %v935_v53, %v504_v58 }
 0x6ca   :  { %v496_v55 = vadd.f32 %v495_v54, %v1145_v39  ;;  %v608_v54 = vld [vmem:[%s1235_s3 + $0x2] sm:$0x3] }
 0x6cc   :  { %936 = vtanh.f32 %v496_v55  ;;  %v739_v55 = vrot.slane %v608_v54, %v68_v18 }
 0x6d9   :  { %v937_v56 = vpop.eup %936 }
 0x6da   :  { %500 = vrot.lane.b32.xlu1 %v937_v56, %s1040_s7  ;;  %v743_v56 = vrot.slane %v608_v54, %v72_v34 }
 0x74c   :  { %v501_v59 = vpop.permute.xlu1 %500 }
 0x74d   :  { %v503_v61 = vmul.f32 %v501_v59, %v498_v57  ;;  %v834_v57 = vld [vmem:[%s1235_s3 + $0x2] ss:$0 sm:$0xff]  ;;  %s1044_s3 = smov [#allocation9]  }
 0x74e   :  { %s801_s15 = sshll.u32 %s1044_s3, 4  ;;  %s802_s15 = int_to_ptr.vmem [resolvable:$true] %s801_s15 }
 0x74f   :  { %v507_v62 = vadd.f32 %v506_v60, %v503_v61  ;;  %s1006_s16 = scalar_lea.vmem %s802_s15, 16  ;;  %s1010_s17 = scalar_lea.vmem %s802_s15, 32 }
 0x750   :  { %p1007_p1 = scmp.ne.s32.totalorder %s802_s15, %s1006_s16  ;;  %p1011_p2 = scmp.lt.s32.totalorder %s802_s15, %s802_s15 }
 0x751   :  { %v514_v63 = vpack.c.bf16 %v507_v62, %v507_v62  ;;  %v588_v13 = vrot.slane %v507_v62, 7  ;;  %p1012_p3 = scmp.lt.s32.totalorder %s1010_s17, %s1006_s16 }
 0x753   :  { %v516_v1 = vshrl.u32 %v514_v63, 16  ;;  %p1013_p4 = por %p1012_p3, %p1011_p2 }
 0x755   :  { %v518_v2 = vrot.slane %v516_v1, 1  ;;  %p1014_p5 = pnand %p1013_p4, %p1007_p1 }
 0x757   :  { %519 = vrot.lane.b32.xlu0 %v518_v2, %s1040_s7 }
 0x75b   :  { %642 = vrot.lane.b32.xlu0 %v904_v3, %s1040_s7 }
 0x75f   :  { %263 = vrot.lane.b32.xlu0 %v1149_v47, %s1040_s7 }
 0x763   :  { %427 = vrot.lane.b32.xlu0 %v425_v36, %s1040_s7  ;;  %v911_v36 = vld [vmem:[#allocation8 + $0x4] ss:$12 sps:$4 sm:$0xff]  }
 0x7c9   :  { %v520_v5 = vpop.permute.xlu0 %519 }
 0x7ca   :  { %832 = vmatmul.mubr.msk.bf16.vlgmr.msra.gmra.mxu1 %vm190_vm1, %v520_v5 }
 0x7cd   :  { %v643_v7 = vpop.permute.xlu0 %642 }
 0x7d1   :  { %v264_v11 = vpop.permute.xlu0 %263 }
 0x7d2   :  { %267 = vst.msk [vmem:[#allocation2] sm:$0x1] %vm266_vm2, %v264_v11 }
 0x7d5   :  { %v428_v16 = vpop.permute.xlu0 %427 }
 0x7d6   :  { %431 = vst.msk [vmem:[#allocation2] sm:$0x4] %vm430_vm3, %v428_v16 }
 0x88a   :  { %v558_v19 = vpop.f32.mrf.mxu1 }
 0x88b   :  { %v566_v20 = vrot.slane %v558_v19, 4 }
 0x88c   :  { %v560_v21 = vpop.f32.mrf.mxu1 }
 0x88d   :  { %v568_v22 = vadd.f32 %v566_v20, %v1136_v24  ;;  %v575_v0 = vadd.f32 %v560_v21, %v1140_v35  ;;  %v1041_v24 = vmov 0.0   ;;  %v906_v35 = vld [vmem:[#allocation6 + $0x14] ss:$8 sps:$4 sm:$0xff]  }
 0x88e   :  { %v562_v23 = vpop.f32.mrf.mxu1  ;;  %853 = vmatprep.subr.bf16.mxu0 %v1041_v24  ;;  %865 = vmatprep.subr.bf16.mxu1 %v1041_v24 }
 0x88f   :  { %v833_v25 = vmul.f32 -1.442695, %v568_v22  ;;  %v577_v6 = vrot.slane %v575_v0, 4  ;;  %854 = vmatpush3.bf16.msra.mxu0 %v643_v7  ;;  %861 = vmatprep.mubr.msk.bf16.mxu0 %vm1042_vm4, %v1041_v24 }
 0x890   :  { %v563_v47 = vpop.f32.mrf.mxu1  ;;  %855 = vmatprep.subr.bf16.mxu0 %v1041_v24  ;;  %869 = vmatprep.mubr.msk.bf16.mxu1 %vm1042_vm4, %v1041_v24 }
 0x891   :  { %938 = vpow2.f32 %v833_v25 }
 0x89e   :  { %v939_v4 = vpop.eup %938 }
 0x89f   :  { %v572_v26 = vadd.f32 1.0, %v939_v4 }
 0x8a1   :  { %940 = vrcp.f32 %v572_v26 }
 0x8ae   :  { %v941_v27 = vpop.eup %940 }
 0x8af   :  { %v579_v8 = vmul.f32 %v941_v27, %v577_v6  ;;  %v590_v29 = vmul.f32 %v941_v27, %v588_v13 }
 0x8b1   :  { %v580_v10 = vadd.f32 %v579_v8, %v1145_v39  ;;  %v582_v39 = vsub.f32 1.0, %v941_v27 }
 0x8b3   :  { %942 = vtanh.f32 %v580_v10 }
 0x8c0   :  { %v943_v12 = vpop.eup %942 }
 0x8c1   :  { %584 = vrot.lane.b32.xlu1 %v943_v12, %s1040_s7 }
 0x8c5   :  { %640 = vrot.lane.b32.xlu1 %v905_v28, %s1040_s7 }
 0x8c9   :  { %344 = vrot.lane.b32.xlu1 %v1168_v14, %s1040_s7  ;;  %v907_v14 = vld [vmem:[#allocation6 + $0x4] ss:$8 sps:$4 sm:$0xff]  }
 0x8cd   :  { %509 = vrot.lane.b32.xlu1 %v507_v62, %s1040_s7 }
 0x8d1   :  { %638 = vrot.lane.b32.xlu1 %v906_v35, %s1040_s7 }
 0x8d5   :  { %726 = vrot.lane.b32.xlu1 %v908_v31, %s1040_s7 }
 0x8d9   :  { %722 = vrot.lane.b32.xlu1 %v911_v36, %s1040_s7 }
 0x8dd   :  { %744 = vrot.lane.b32.xlu1 %v739_v55, %s1043_s12 }
 0x933   :  { %v585_v15 = vpop.permute.xlu1 %584 }
 0x934   :  { %v587_v30 = vmul.f32 %v585_v15, %v582_v39 }
 0x936   :  { %v591_v32 = vadd.f32 %v590_v29, %v587_v30 }
 0x937   :  { %v641_v33 = vpop.permute.xlu1 %640 }
 0x938   :  { %593 = vrot.lane.b32.xlu0 %v591_v32, %s1040_s7  ;;  %856 = vmatpush3.bf16.msra.mxu0 %v641_v33 }
 0x939   :  { %857 = vmatprep.subr.bf16.mxu0 %v1041_v24 }
 0x93b   :  { %v345_v37 = vpop.permute.xlu1 %344 }
 0x93c   :  { %348 = vst.msk [vmem:[#allocation2] sm:$0x2] %vm347_vm5, %v345_v37  ;;  %636 = vrot.lane.b32.xlu0 %v907_v14, %s1040_s7 }
 0x93f   :  { %v510_v40 = vpop.permute.xlu1 %509 }
 0x940   :  { %513 = vst.msk [vmem:[#allocation2] sm:$0x8] %vm512_vm6, %v510_v40  ;;  %728 = vrot.lane.b32.xlu0 %v910_v38, %s1040_s7 }
 0x943   :  { %v639_v42 = vpop.permute.xlu1 %638 }
 0x944   :  { %858 = vmatpush3.bf16.msra.mxu0 %v639_v42  ;;  %724 = vrot.lane.b32.xlu0 %v913_v41, %s1040_s7 }
 0x945   :  { %859 = vmatprep.subr.bf16.mxu0 %v1041_v24 }
 0x947   :  { %v727_v48 = vpop.permute.xlu1 %726 }
 0x948   :  { %746 = vrot.lane.b32.xlu0 %v743_v56, %s1043_s12 }
 0x94b   :  { %v723_v51 = vpop.permute.xlu1 %722 }
 0x94f   :  { %v745_v16 = vpop.permute.xlu1 %744 }
 0x9aa   :  { %v594_v43 = vpop.permute.xlu0 %593 }
 0x9ab   :  { %597 = vst.msk [vmem:[#allocation2] sm:$0x10] %vm596_vm7, %v594_v43 }
 0x9ae   :  { %v637_v44 = vpop.permute.xlu0 %636 }
 0x9af   :  { %860 = vmatpush3.bf16.msra.mxu0 %v637_v44 }
 0x9b2   :  { %v598_v45 = vld [vmem:[#allocation2] sm:$0x1f]  ;;  %v729_v49 = vpop.permute.xlu0 %728 }
 0x9b3   :  { %v609_v46 = vpack.c.bf16 %v598_v45, %v598_v45  ;;  %v732_v50 = vsel %vm190_vm1, %v727_v48, %v729_v49 }
 0x9b4   :  { %866 = vmatpush3.bf16.msra.mxu1 %v732_v50 }
 0x9b5   :  { %862 = vmatmul.mubr.msk.bf16.vlgmr.msra.gmra.mxu0 %vm190_vm1, %v609_v46  ;;  %867 = vmatprep.subr.bf16.mxu1 %v1041_v24 }
 0x9b6   :  { %v725_v52 = vpop.permute.xlu0 %724 }
 0x9b7   :  { %v731_v53 = vsel %vm190_vm1, %v723_v51, %v725_v52 }
 0x9b8   :  { %868 = vmatpush3.bf16.msra.mxu1 %v731_v53 }
 0x9ba   :  { %v747_v19 = vpop.permute.xlu0 %746 }
 0x9bb   :  { %v749_v20 = vsel %vm748_vm9, %v745_v16, %v747_v19 }
 0xa75   :  { %v685_v58 = vpop.f32.mrf.mxu0 }
 0xa76   :  { %v686_v59 = vadd.f32 %v834_v57, %v685_v58 }
 0xa77   :  { %v863_v60 = vpop.f32.mrf.mxu0 }
 0xa78   :  { %944 = vtanh.f32 %v686_v59 }
 0xa79   :  { %v688_v61 = vpop.f32.mrf.mxu0 }
 0xa7b   :  { %v864_v62 = vpop.f32.mrf.mxu0 }
 0xa85   :  { %v945_v63 = vpop.eup %944 }
 0xa86   :  { %v692_v18 = vmul.f32 %v945_v63, %v1088_v9 }
 0xa88   :  { %v694_v1 = vsel %vm693_vm8, %v692_v18, 0.0 }
 0xa89   :  { %v695_v17 = vrot.slane %v694_v1, 4 }
 0xa8b   :  { %v696_v34 = vadd.f32 %v695_v17, %v694_v1 }
 0xa8d   :  { %v697_v2 = vrot.slane %v696_v34, 2 }
 0xa8f   :  { %v698_v3 = vadd.f32 %v697_v2, %v696_v34 }
 0xa91   :  { %v699_v5 = vrot.slane %v698_v3, 1 }
 0xa93   :  { %v700_v7 = vadd.f32 %v699_v5, %v698_v3 }
 0xa95   :  { %v701_v11 = vpack.c.bf16 %v700_v7, %v700_v7 }
 0xa97   :  { %870 = vmatmul.mubr.msk.bf16.vlgmr.msra.gmra.mxu1 %vm96_vm0, %v701_v11 }
 0xb57   :  { %v788_v21 = vpop.f32.mrf.mxu1 }
 0xb58   :  { %v789_v22 = vadd.f32 %v788_v21, %v749_v20 }
 0xb59   :  { %v871_v9 = vpop.f32.mrf.mxu1 }
 0xb5a   :  { %794 = vst [vmem:[#allocation9] sm:$0x1] %v789_v22 }
 0xb5b   :  { %v791_v23 = vpop.f32.mrf.mxu1 }
 0xb5c   :  { %1017 = shalt.err (!%p1014_p5)
}
 0xb5d   :  { %804 = dma.vmem_to_hbm [thread:$0]  %s802_s15, 16, %s1236_s4, [#allocation5]   ;;  %v872_v25 = vpop.f32.mrf.mxu1 }
 0xb5e   :  { %1030 = dma.done.wait [#allocation5], 16  }
 0xb5f   :  { %1031 = vsyncadd [#allocation5], 4294967280 }
 0xb60   :  { %808 = vsyncpa [#allocation4], 1 }
 0xb61   :  { %809 = vsyncpa [#allocation7], 1 }
 0xb62   :  { %810 = vsyncpa [#allocation5], 1 }

</bundles_post_ra>
